<compile_context>
chip_gen: v6e
topology: v6e:2x2x1
jax: 0.10.0
libtpu: 0.0.40
codegen_flags: <defaults>
</compile_context>

<pallas_src>
import math

import jax
import jax.numpy as jnp
from jax import lax
from jax.experimental import pallas as pl
from jax.experimental.pallas import tpu as pltpu


def _round_up(x, m):
    return (x + m - 1) // m * m


def _largest_divisor_leq(n, cap):
    c = max(1, min(cap, n))
    while n % c:
        c -= 1
    return c


# ---------------------------------------------------------------------------
# 1) Time-parallel input projection: gates_x = x @ W_ih^T + b_ih
# ---------------------------------------------------------------------------
def _input_proj_kernel(x_ref, w_ref, b_ref, o_ref):
    # (R, I)bf16 @ (I, 4H)bf16 -> f32 accumulation on the MXU, + bias (f32).
    o_ref[...] = (
        jnp.dot(x_ref[...], w_ref[...], preferred_element_type=jnp.float32)
        + b_ref[...]
    ).astype(o_ref.dtype)


def _input_projection(x2d, wih_t, bias2d, *, row_tile=512):
    """x2d: (R, I) bf16, wih_t: (I, 4H) bf16, bias2d: (1, 4H) f32 -> (R, 4H) f32."""
    R, I = x2d.shape
    G = wih_t.shape[1]
    rt = min(row_tile, R)            # R is a multiple of 8 (batch padded)
    Rp = _round_up(R, rt)
    if Rp != R:
        x2d = jnp.pad(x2d, ((0, Rp - R), (0, 0)))

    out = pl.pallas_call(
        _input_proj_kernel,
        out_shape=jax.ShapeDtypeStruct((Rp, G), jnp.float32),
        grid_spec=pltpu.PrefetchScalarGridSpec(
            num_scalar_prefetch=0,
            grid=(Rp // rt,),
            in_specs=[
                pl.BlockSpec((rt, I), lambda r: (r, 0)),   # x rows (streamed)
                pl.BlockSpec((I, G), lambda r: (0, 0)),    # W_ih^T (resident)
                pl.BlockSpec((1, G), lambda r: (0, 0)),    # bias   (resident)
            ],
            out_specs=pl.BlockSpec((rt, G), lambda r: (r, 0)),
        ),
        compiler_params=pltpu.CompilerParams(
            dimension_semantics=("parallel",),   # rows are independent
        ),
    )(x2d, wih_t, bias2d)
    return out[:R]


# ---------------------------------------------------------------------------
# 2) Sequential recurrence: per step only  h @ W_hh^T  + precomputed gates_x
# ---------------------------------------------------------------------------
def _lstm_recurrent_kernel(gx_ref, whh_ref, y_ref, hN_ref, cN_ref):
    H = hN_ref.shape[1]
    Tc = gx_ref.shape[0]

    # h/c carries live in the constant-index output blocks, which stay resident
    # in VMEM across the whole time grid (accumulator pattern).
    @pl.when(pl.program_id(0) == 0)
    def _():
        hN_ref[...] = jnp.zeros_like(hN_ref)
        cN_ref[...] = jnp.zeros_like(cN_ref)

    def step(s, carry):
        h, c = carry                                     # f32 carries
        gates = gx_ref[s] + jnp.dot(
            h.astype(whh_ref.dtype), whh_ref[...],       # bf16 MXU operands
            preferred_element_type=jnp.float32)          # f32 accumulation
        # At H=32 the 4H gate axis is exactly one 128-lane tile; the per-gate
        # slices below are cheap sub-vreg selects. For production H >= 128 one
        # would permute the weight columns so each gate fills whole lane tiles.
        i = jax.nn.sigmoid(gates[:, 0:H])
        f = jax.nn.sigmoid(gates[:, H:2 * H])
        a = jnp.tanh(gates[:, 2 * H:3 * H])
        o = jax.nn.sigmoid(gates[:, 3 * H:4 * H])
        c_t = i * a + f * c
        h_t = o * jnp.tanh(c_t)
        y_ref[s] = h_t.astype(y_ref.dtype)
        return (h_t, c_t)

    h_fin, c_fin = lax.fori_loop(0, Tc, step, (hN_ref[...], cN_ref[...]),
                                 unroll=True)
    hN_ref[...] = h_fin
    cN_ref[...] = c_fin


# ---------------------------------------------------------------------------
# Wrapper
# ---------------------------------------------------------------------------
def lstm_quantized_forward(x, w_ih, w_hh, b_ih, *, time_chunk=16):
    """x: (T, B, I); w_ih: (4H, I); w_hh: (4H, H); b_ih: (4H,)."""
    T, B, I = x.shape
    G, H = w_hh.shape          # G = 4H
    assert G == 4 * H and w_ih.shape == (G, I) and b_ih.shape == (G,)

    # bf16 operands for the MXU; bias / gates / cell state stay f32.
    wih_t = jnp.asarray(w_ih, jnp.bfloat16).T              # (I, 4H)
    whh_t = jnp.asarray(w_hh, jnp.bfloat16).T              # (H, 4H)
    bias2d = jnp.asarray(b_ih, jnp.float32).reshape(1, G)  # (1, 4H)

    # Pad batch to a full sublane (multiple of 8); padded rows are independent
    # and get sliced off at the end.
    Bp = _round_up(B, 8)
    xp = jnp.asarray(x, jnp.bfloat16)
    if Bp != B:
        xp = jnp.pad(xp, ((0, 0), (0, Bp - B), (0, 0)))

    # ---- 1) one big MXU-dense projection over all T*Bp rows -----------------
    gates_x = _input_projection(xp.reshape(T * Bp, I), wih_t, bias2d)
    gates_x = gates_x.reshape(T, Bp, G)                    # f32

    # ---- 2) recurrence, Tc timesteps per grid step ---------------------------
    Tc = _largest_divisor_leq(T, time_chunk)

    # Raise the scoped VMEM limit only when the resident working set needs it
    # (resident W_hh + double-buffered gates_x / y chunks + carries).
    resident = (whh_t.size * 2
                + 2 * (Tc * Bp * G * 4 + Tc * Bp * H * 4)
                + 2 * Bp * H * 4)
    vmem_limit = None
    if resident > 12 * 1024 * 1024:
        vmem_limit = min(int(2 * resident) + (8 << 20), 96 * 1024 * 1024)

    y, h_fin, c_fin = pl.pallas_call(
        _lstm_recurrent_kernel,
        out_shape=(
            jax.ShapeDtypeStruct((T, Bp, H), jnp.float32),
            jax.ShapeDtypeStruct((Bp, H), jnp.float32),
            jax.ShapeDtypeStruct((Bp, H), jnp.float32),
        ),
        grid_spec=pltpu.PrefetchScalarGridSpec(
            num_scalar_prefetch=0,
            grid=(T // Tc,),
            in_specs=[
                pl.BlockSpec((Tc, Bp, G), lambda t: (t, 0, 0)),  # gates_x chunk
                pl.BlockSpec((H, G), lambda t: (0, 0)),          # W_hh^T resident
            ],
            out_specs=[
                pl.BlockSpec((Tc, Bp, H), lambda t: (t, 0, 0)),  # y chunk
                pl.BlockSpec((Bp, H), lambda t: (0, 0)),         # h carry / final
                pl.BlockSpec((Bp, H), lambda t: (0, 0)),         # c carry / final
            ],
        ),
        compiler_params=pltpu.CompilerParams(
            dimension_semantics=("arbitrary",),   # time steps are sequential
            vmem_limit_bytes=vmem_limit,
        ),
    )(gates_x, whh_t)

    y = y[:, :B]
    h_fin = h_fin[:B]
    c_fin = c_fin[:B]
    # match PyTorch: h, c returned with a leading num_layers=1 axis
    return y, (h_fin[None, :, :], c_fin[None, :, :])


# ---------------------------------------------------------------------------
# Pure-JAX f32 reference of the PyTorch forward (norm=None branch)
# ---------------------------------------------------------------------------
def lstm_reference(x, w_ih, w_hh, b_ih):
    T, B, I = x.shape
    H = w_hh.shape[1]

    def step(carry, x_t):
        h, c = carry
        gates = x_t @ w_ih.T + h @ w_hh.T + b_ih
        i = jax.nn.sigmoid(gates[:, 0:H])
        f = jax.nn.sigmoid(gates[:, H:2 * H])
        a = jnp.tanh(gates[:, 2 * H:3 * H])
        o = jax.nn.sigmoid(gates[:, 3 * H:4 * H])
        c_t = i * a + f * c
        h_t = o * jnp.tanh(c_t)
        return (h_t, c_t), h_t

    h0 = jnp.zeros((B, H), jnp.float32)
    c0 = jnp.zeros((B, H), jnp.float32)
    (hT, cT), ys = lax.scan(step, (h0, c0), x)
    return ys, (hT[None], cT[None])


if __name__ == "__main__":
    # Shapes consistent with the module: seq=8, batch=2, input=16, hidden=32
    T, B, I, H = 8, 2, 16, 32
    G = 4 * H

    key = jax.random.PRNGKey(0)
    kx, kw1, kw2, kb = jax.random.split(key, 4)

    # reset_parameters: U(-1/sqrt(H), 1/sqrt(H)); forward uses the (already
    # quantized-in-place) weight_*_l0 tensors directly, so plain f32 params here.
    stdv = 1.0 / math.sqrt(H)
    w_ih = jax.random.uniform(kw1, (G, I), jnp.float32, -stdv, stdv)
    w_hh = jax.random.uniform(kw2, (G, H), jnp.float32, -stdv, stdv)
    b_ih = jax.random.uniform(kb, (G,), jnp.float32, -stdv, stdv)

    x = jax.random.normal(kx, (T, B, I), jnp.float32)

    y_ref, (h_ref, c_ref) = lstm_reference(x, w_ih, w_hh, b_ih)

    # bf16 MXU operands -> compare against the f32 reference with a bf16-level
    # tolerance.
    for tc in (4, 8):   # tc=4 exercises the cross-chunk h/c carry path
        y, (h_fin, c_fin) = lstm_quantized_forward(x, w_ih, w_hh, b_ih,
                                                   time_chunk=tc)
        jax.block_until_ready((y, h_fin, c_fin))
        assert jnp.allclose(y, y_ref, atol=2e-2), f"output mismatch (Tc={tc})"
        assert jnp.allclose(h_fin, h_ref, atol=2e-2), f"h mismatch (Tc={tc})"
        assert jnp.allclose(c_fin, c_ref, atol=2e-2), f"c mismatch (Tc={tc})"

    print("KERNEL_OK")
</pallas_src>

<mosaic_0001>
module attributes {stable_mosaic.version = 11 : i64} {
  func.func @_input_proj_kernel(%arg0: i32, %arg1: memref<64x16xbf16, #tpu.memory_space<vmem>>, %arg2: memref<16x128xbf16, #tpu.memory_space<vmem>>, %arg3: memref<1x128xf32, #tpu.memory_space<vmem>>, %arg4: memref<64x128xf32, #tpu.memory_space<vmem>>) attributes {dimension_semantics = [#tpu.dimension_semantics<parallel>], iteration_bounds = array<i64: 1>, scalar_prefetch = 0 : i64, scratch_operands = 0 : i64, tpu.core_type = #tpu.core_type<tc>, window_params = [{transform_indices = @transform_0, window_bounds = array<i64: 64, 16>}, {pipeline_mode = #tpu.pipeline_mode<synchronous>, transform_indices = @transform_1, window_bounds = array<i64: 16, 128>}, {pipeline_mode = #tpu.pipeline_mode<synchronous>, transform_indices = @transform_2, window_bounds = array<i64: 1, 128>}, {transform_indices = @transform_3, window_bounds = array<i64: 64, 128>}]} {
    %c0 = arith.constant 0 : index
    %c0_0 = arith.constant 0 : index
    %0 = vector.load %arg1[%c0, %c0_0] : memref<64x16xbf16, #tpu.memory_space<vmem>>, vector<64x16xbf16>
    %c0_1 = arith.constant 0 : index
    %c0_2 = arith.constant 0 : index
    %1 = vector.load %arg2[%c0_1, %c0_2] : memref<16x128xbf16, #tpu.memory_space<vmem>>, vector<16x128xbf16>
    %cst = arith.constant dense<0.000000e+00> : vector<64x128xf32>
    %2 = tpu.matmul %0, %1, %cst {dimension_numbers = #tpu.dot_dimension_numbers<[1], [0], [0], [1], [0, 0, 1, 1], [], []>} : vector<64x16xbf16>, vector<16x128xbf16>, vector<64x128xf32> -> vector<64x128xf32>
    %c0_3 = arith.constant 0 : index
    %c0_4 = arith.constant 0 : index
    %3 = vector.load %arg3[%c0_3, %c0_4] : memref<1x128xf32, #tpu.memory_space<vmem>>, vector<1x128xf32>
    %4 = vector.broadcast %3 : vector<1x128xf32> to vector<64x128xf32>
    %5 = arith.addf %2, %4 : vector<64x128xf32>
    %c0_5 = arith.constant 0 : index
    %c0_6 = arith.constant 0 : index
    %6 = vector.load %arg4[%c0_5, %c0_6] : memref<64x128xf32, #tpu.memory_space<vmem>>, vector<64x128xf32>
    tpu.vector_store %arg4[%c0_5, %c0_6], %5 {strides = array<i32>} : memref<64x128xf32, #tpu.memory_space<vmem>>, vector<64x128xf32>,
    return
  }
  func.func @transform_0(%arg0: i32) -> (i32, i32) {
    %c0_i32 = arith.constant 0 : i32
    %c0_i32_0 = arith.constant 0 : i32
    return %arg0, %c0_i32 : i32, i32
  }
  func.func @transform_1(%arg0: i32) -> (i32, i32) {
    %c0_i32 = arith.constant 0 : i32
    %c0_i32_0 = arith.constant 0 : i32
    %c0_i32_1 = arith.constant 0 : i32
    return %c0_i32, %c0_i32_0 : i32, i32
  }
  func.func @transform_2(%arg0: i32) -> (i32, i32) {
    %c0_i32 = arith.constant 0 : i32
    %c0_i32_0 = arith.constant 0 : i32
    %c0_i32_1 = arith.constant 0 : i32
    return %c0_i32, %c0_i32_0 : i32, i32
  }
  func.func @transform_3(%arg0: i32) -> (i32, i32) {
    %c0_i32 = arith.constant 0 : i32
    %c0_i32_0 = arith.constant 0 : i32
    return %arg0, %c0_i32 : i32, i32
  }
}

</mosaic_0001>

<bundles_post_ra>
// kernel: tpu_custom_call.1
= control target key start
LH: loop header
LB: loop body
LE: loop exit
PB: predicated region body
PF: predicated region fallthrough
CT: control target
= control target key end

     0   :  { %vm59_vm0 = vcmask 130048   ;;  %s262_s0 = inlined_call_operand.vmem [shape: bf16[64,16], index: 0, kind: input, shape index: {}]   ;;  %s263_s1 = inlined_call_operand.vmem [shape: bf16[16,128], index: 1, kind: input, shape index: {}]   ;;  %s264_s2 = inlined_call_operand.vmem [shape: f32[1,128], index: 2, kind: input, shape index: {}]   ;;  %s265_s3 = inlined_call_operand.hbm [shape: f32[64,128], index: 3, kind: output, shape index: {}]  }
   0x1   :  { %v191_v0 = vld [vmem:[%s263_s1] sm:$0xff]   ;;  %v193_v2 = vld [vmem:[%s262_s0 + $0x10] sm:$0xff]   ;;  %v194_v3 = vld [vmem:[%s262_s0 + $0x8] sm:$0xff]  }
   0x2   :  { %v192_v1 = vld [vmem:[%s262_s0] sm:$0xff]   ;;  %176 = vmatprep.subr.bf16.mxu0 %v191_v0  ;;  %186 = vmatprep.subr.bf16.mxu1 %v191_v0  ;;  %v195_v4 = vld [vmem:[%s262_s0 + $0x18] sm:$0xff]  }
   0x3   :  { %177 = vmatpush3.bf16.msra.mxu0 %v191_v0  ;;  %187 = vmatpush3.bf16.msra.mxu1 %v191_v0 }
   0x4   :  { %178 = vmatprep.mubr.msk.bf16.mxu0 %vm59_vm0, %v192_v1  ;;  %182 = vmatprep.mubr.msk.bf16.mxu1 %vm59_vm0, %v193_v2 }
   0x5   :  { %8 = vsyncpa [#allocation3], 0  ;;  %v161_v5 = vld [vmem:[%s264_s2] ss:$0 sm:$0xff]  ;;  %s218_s23 = smov [#allocation2]  }
   0x6   :  { %179 = vmatmul.mubr.msk.bf16.vlgmr.msra.gmra.mxu0 %vm59_vm0, %v194_v3  ;;  %183 = vmatmul.mubr.msk.bf16.vlgmr.msra.gmra.mxu1 %vm59_vm0, %v195_v4  ;;  %s150_s24 = sshll.u32 %s218_s23, 4  ;;  %s151_s24 = int_to_ptr.vmem [resolvable:$true] %s150_s24 }
   0x7   :  { %s196_s0 = scalar_lea.vmem %s151_s24, 1024  ;;  %p201_p1 = scmp.lt.s32.totalorder %s151_s24, %s151_s24 }
   0x8   :  { %p197_p0 = scmp.ne.s32.totalorder %s151_s24, %s196_s0  ;;  %p202_p2 = scmp.lt.s32.totalorder %s196_s0, %s196_s0 }
   0xa   :  { %p203_p3 = por %p202_p2, %p201_p1 }
   0xc   :  { %p204_p4 = pnand %p203_p3, %p197_p0 }
  0xc6   :  { %v180_v6 = vpop.f32.mrf.mxu0  ;;  %v184_v7 = vpop.f32.mrf.mxu1 }
  0xc7   :  { %v115_v8 = vadd.f32 %v180_v6, %v161_v5  ;;  %v131_v9 = vadd.f32 %v184_v7, %v161_v5 }
  0xc8   :  { %v106_v10 = vpop.f32.mrf.mxu0  ;;  %v122_v11 = vpop.f32.mrf.mxu1 }
  0xc9   :  { %139 = vst [vmem:[#allocation2 + $0x10] sm:$0xff] %v115_v8  ;;  %143 = vst [vmem:[#allocation2 + $0x30] sm:$0xff] %v131_v9  ;;  %v107_v12 = vadd.f32 %v161_v5, %v106_v10  ;;  %v123_v13 = vadd.f32 %v161_v5, %v122_v11 }
  0xca   :  { %v181_v14 = vpop.f32.mrf.mxu0  ;;  %v185_v15 = vpop.f32.mrf.mxu1 }
  0xcb   :  { %137 = vst [vmem:[#allocation2] sm:$0xff] %v107_v12  ;;  %141 = vst [vmem:[#allocation2 + $0x20] sm:$0xff] %v123_v13  ;;  %v118_v16 = vadd.f32 %v181_v14, %v161_v5  ;;  %v134_v17 = vadd.f32 %v185_v15, %v161_v5 }
  0xcc   :  { %v109_v18 = vpop.f32.mrf.mxu0  ;;  %v125_v19 = vpop.f32.mrf.mxu1 }
  0xcd   :  { %140 = vst [vmem:[#allocation2 + $0x18] sm:$0xff] %v118_v16  ;;  %144 = vst [vmem:[#allocation2 + $0x38] sm:$0xff] %v134_v17  ;;  %v110_v20 = vadd.f32 %v161_v5, %v109_v18  ;;  %v126_v21 = vadd.f32 %v161_v5, %v125_v19 }
  0xcf   :  { %138 = vst [vmem:[#allocation2 + $0x8] sm:$0xff] %v110_v20  ;;  %142 = vst [vmem:[#allocation2 + $0x28] sm:$0xff] %v126_v21 }
  0xd0   :  { %207 = shalt.err (!%p204_p4)
}
  0xd1   :  { %s219_s2 = smov 128   ;;  %s220_s25 = smov 8  }
  0xd2   :  { %156 = dma.vmem_to_hbm [thread:$0]  %s151_s24, 1024, %s265_s3, [#allocation3], %s219_s2, %s219_s2, %s220_s25  }
  0xd3   :  { %216 = dma.done.wait [#allocation3], 1024  }
  0xd4   :  { %217 = vsyncadd [#allocation3], 4294966272 }
  0xd5   :  { %160 = vsyncpa [#allocation3], 1 }

</bundles_post_ra>
